<compile_context>
chip_gen: v7x
topology: tpu7x:2x2x1
jax: 0.10.0
libtpu: 0.0.40
codegen_flags: <defaults>
</compile_context>

<pallas_src>
import jax
import jax.numpy as jnp
from jax.experimental import pallas as pl
from jax.experimental.pallas import tpu as pltpu


# ---------------------------------------------------------------------------
# Sizing helpers
# ---------------------------------------------------------------------------
def _sublane_granule(itemsize):
    """Min row granule so blocks stay sublane-aligned: 8 f32, 16 bf16, 32 i8."""
    return 8 * max(1, 4 // max(1, min(int(itemsize), 4)))


def _vmem_budget_and_cap():
    """(per-block f32 working-set budget, vmem_limit cap), generation aware."""
    try:
        info = pltpu.get_tpu_info()
        vmem = getattr(info, "vmem_capacity_bytes", 0) or 0
        if vmem >= (100 << 20):          # v5e / v6e: 128 MiB VMEM per core
            return 8 << 20, 96 << 20
    except Exception:                     # pragma: no cover - be conservative
        pass
    return 4 << 20, 52 << 20              # safe for v7x (64 MiB VMEM per core)


def _pick_block_h(H, W, granule, budget_bytes):
    """Largest granule-multiple row tile within the f32 working-set budget.

    Prefers exact divisors of H (no ragged tile), and among those the largest
    one that still yields >= 2 row tiles.
    """
    bytes_per_row = W * 4                       # f32 in-kernel working set
    max_rows = max(granule, (budget_bytes // bytes_per_row) // granule * granule)
    max_rows = min(max_rows, (H // granule) * granule)
    divisors = [th for th in range(granule, max_rows + 1, granule) if H % th == 0]
    multi = [th for th in divisors if H // th >= 2]
    if multi:
        return multi[-1]
    if divisors:
        return divisors[-1]
    return max_rows                              # ragged last tile


# ---------------------------------------------------------------------------
# Kernels
# ---------------------------------------------------------------------------
def _make_row_tile_kernel(H, block_h, use_roll, ragged):
    """Kernel over one (block_h, W) slab of one channel, with 1-row vertical
    halos supplied via two thin granule-row halo blocks of the same input."""

    def kernel(x_ref, top_ref, bot_ref, o_ref):
        i = pl.program_id(1)                 # row-tile index
        n = pl.num_programs(1)
        TH, W = o_ref.shape
        g = top_ref.shape[0]

        x = x_ref[...].astype(jnp.float32)
        row = jax.lax.broadcasted_iota(jnp.int32, (TH, 1), 0)
        if ragged:
            # Last tile may extend past H: zero the garbage rows so the
            # bottom image border sees zero padding; their stores are dropped.
            valid = H - i * block_h
            x = jnp.where(row < valid, x, 0.0)

        # Row just above / below this tile (zero at the image border).
        top = top_ref[g - 1:g, :].astype(jnp.float32)
        bot = bot_ref[0:1, :].astype(jnp.float32)
        top = top * (i > 0)
        bot = bot * (i < n - 1)

        # ---- vertical 3-tap [-0.5, 1, -0.5] ----
        if use_roll:
            up = jnp.where(row == 0, top, pltpu.roll(x, 1, axis=0))
            down = jnp.where(row == TH - 1, bot, pltpu.roll(x, TH - 1, axis=0))
        else:
            up = jnp.concatenate([top, x[:-1, :]], axis=0)
            down = jnp.concatenate([x[1:, :], bot], axis=0)
        vx = x - 0.5 * (up + down)

        # ---- horizontal 3-tap [-0.5, 1, -0.5] with zero padding ----
        if use_roll:
            col = jax.lax.broadcasted_iota(jnp.int32, (1, W), 1)
            left = jnp.where(col > 0, pltpu.roll(vx, 1, axis=1), 0.0)
            right = jnp.where(col < W - 1, pltpu.roll(vx, W - 1, axis=1), 0.0)
        else:
            z = jnp.zeros((TH, 1), jnp.float32)
            left = jnp.concatenate([z, vx[:, :-1]], axis=1)
            right = jnp.concatenate([vx[:, 1:], z], axis=1)

        o_ref[...] = (vx - 0.5 * (left + right)).astype(o_ref.dtype)

    return kernel


def _tiny_kernel(x_ref, o_ref):
    """Single-block per-channel path for H < sublane granule (tiny images)."""
    Hc, W = o_ref.shape
    x = x_ref[...].astype(jnp.float32)
    zrow = jnp.zeros((1, W), jnp.float32)
    up = jnp.concatenate([zrow, x[:-1, :]], axis=0)
    down = jnp.concatenate([x[1:, :], zrow], axis=0)
    vx = x - 0.5 * (up + down)
    zcol = jnp.zeros((Hc, 1), jnp.float32)
    left = jnp.concatenate([zcol, vx[:, :-1]], axis=1)
    right = jnp.concatenate([vx[:, 1:], zcol], axis=1)
    o_ref[...] = (vx - 0.5 * (left + right)).astype(o_ref.dtype)


# ---------------------------------------------------------------------------
# Wrapper (= LaplaceFilter.forward)
# ---------------------------------------------------------------------------
def laplace_filter(x, block_h=None):
    """x: (3, H, W) array (CHW). Returns (3, H, W), same dtype."""
    C, H, W = x.shape
    assert C == 3, "LaplaceFilter is defined for 3 channels"
    itemsize = jnp.dtype(x.dtype).itemsize
    granule = _sublane_granule(itemsize)
    budget, vmem_cap = _vmem_budget_and_cap()

    # ---- tiny images: single block per channel, boundary handled in-kernel
    if H < granule:
        vmem = int(min(max(12 * H * W * 4 + (2 << 20), 8 << 20), vmem_cap))
        return pl.pallas_call(
            _tiny_kernel,
            out_shape=jax.ShapeDtypeStruct((C, H, W), x.dtype),
            grid=(C,),
            in_specs=[pl.BlockSpec((None, H, W), lambda c: (c, 0, 0))],
            out_specs=pl.BlockSpec((None, H, W), lambda c: (c, 0, 0)),
            compiler_params=pltpu.CompilerParams(
                dimension_semantics=("parallel",), vmem_limit_bytes=vmem),
        )(x)

    # ---- tiled path
    if block_h is None:
        block_h = _pick_block_h(H, W, granule, budget)
    else:
        block_h = max(granule, (int(block_h) // granule) * granule)
        block_h = min(block_h, (H // granule) * granule)

    nb = -(-H // block_h)              # row tiles (last one may be ragged)
    rpb = block_h // granule           # halo granule-blocks per row tile
    nhb = -(-H // granule)             # halo granule-blocks along H
    ragged = (H % block_h) != 0
    use_roll = (W % 128) == 0          # lane-aligned: use XLU rolls + masks

    kernel = _make_row_tile_kernel(H, block_h, use_roll, ragged)

    # vmem_limit derived from the actual pipeline footprint (over-estimate).
    blk_in = block_h * W * itemsize
    halo_in = granule * W * itemsize
    f32_blk = block_h * W * 4
    need = 4 * blk_in + 4 * halo_in + 8 * f32_blk + (2 << 20)
    vmem = int(min(max(need, 16 << 20), vmem_cap))

    def main_map(c, i):
        return (c, i, 0)

    def top_map(c, i):
        # granule-block whose LAST row is the row just above this tile.
        return (c, jnp.maximum(i * rpb - 1, 0), 0)

    def bot_map(c, i):
        # granule-block whose FIRST row is the row just below this tile.
        return (c, jnp.minimum((i + 1) * rpb, nhb - 1), 0)

    return pl.pallas_call(
        kernel,
        out_shape=jax.ShapeDtypeStruct((C, H, W), x.dtype),
        grid=(C, nb),
        in_specs=[
            pl.BlockSpec((None, block_h, W), main_map),
            pl.BlockSpec((None, granule, W), top_map),
            pl.BlockSpec((None, granule, W), bot_map),
        ],
        out_specs=pl.BlockSpec((None, block_h, W), main_map),
        compiler_params=pltpu.CompilerParams(
            dimension_semantics=("parallel", "parallel"),
            vmem_limit_bytes=vmem),
    )(x, x, x)


# ---------------------------------------------------------------------------
# Reference + self-test
# ---------------------------------------------------------------------------
def _reference(x):
    C, H, W = x.shape
    w = jnp.array([[0.25, -0.5, 0.25],
                   [-0.5, 1.0, -0.5],
                   [0.25, -0.5, 0.25]], jnp.float32)
    wdn = jnp.broadcast_to(w, (C, 1, 3, 3))       # (out_c, in_c/groups, kh, kw)
    y = jax.lax.conv_general_dilated(
        x[None].astype(jnp.float32), wdn,
        window_strides=(1, 1), padding=((1, 1), (1, 1)),
        feature_group_count=C,
        dimension_numbers=("NCHW", "OIHW", "NCHW"))
    return y[0].astype(x.dtype)


if __name__ == "__main__":
    key = jax.random.PRNGKey(0)
    ks = jax.random.split(key, 5)

    def check(x, y, tol, name):
        ref = _reference(x)
        err = float(jnp.max(jnp.abs(y.astype(jnp.float32) - ref.astype(jnp.float32))))
        assert err <= tol, f"{name}: max abs err {err}"

    # (1) small CHW image (module-sized), concat path (W=16), 2 row tiles.
    x1 = jax.random.normal(ks[0], (3, 16, 16), jnp.float32)
    y1 = laplace_filter(x1)
    jax.block_until_ready(y1)
    assert y1.shape == (3, 16, 16) and y1.dtype == x1.dtype
    check(x1, y1, 1e-5, "16x16")

    # (2) lane-dense width -> roll fast path; auto and explicit tiling.
    x2 = jax.random.normal(ks[1], (3, 64, 256), jnp.float32)
    y2 = laplace_filter(x2)
    jax.block_until_ready(y2)
    check(x2, y2, 1e-5, "64x256 auto")
    y2b = laplace_filter(x2, block_h=16)
    jax.block_until_ready(y2b)
    check(x2, y2b, 1e-5, "64x256 bh16")

    # (3) irregular H -> ragged last tile.
    x3 = jax.random.normal(ks[2], (3, 11, 16), jnp.float32)
    y3 = laplace_filter(x3)
    jax.block_until_ready(y3)
    check(x3, y3, 1e-5, "11x16 ragged")

    # (4) bf16 input -> dtype-aware sublane granule (16 rows), roll path.
    x4 = jax.random.normal(ks[3], (3, 32, 256), jnp.float32).astype(jnp.bfloat16)
    y4 = laplace_filter(x4)
    jax.block_until_ready(y4)
    assert y4.dtype == jnp.bfloat16
    check(x4, y4, 1e-1, "32x256 bf16")

    # (5) tiny H -> single-block per-channel path.
    x5 = jax.random.normal(ks[4], (3, 5, 16), jnp.float32)
    y5 = laplace_filter(x5)
    jax.block_until_ready(y5)
    check(x5, y5, 1e-5, "5x16 tiny")

    print("KERNEL_OK")
</pallas_src>

<mosaic_0001>
module attributes {stable_mosaic.version = 11 : i64} {
  func.func @kernel(%arg0: i32, %arg1: i32, %arg2: memref<1x8x16xf32, #tpu.memory_space<vmem>>, %arg3: memref<1x8x16xf32, #tpu.memory_space<vmem>>, %arg4: memref<1x8x16xf32, #tpu.memory_space<vmem>>, %arg5: memref<1x8x16xf32, #tpu.memory_space<vmem>>) attributes {dimension_semantics = [#tpu.dimension_semantics<parallel>, #tpu.dimension_semantics<parallel>], iteration_bounds = array<i64: 3, 2>, scalar_prefetch = 0 : i64, scratch_operands = 0 : i64, tpu.core_type = #tpu.core_type<tc>, window_params = [{transform_indices = @transform_0, window_bounds = array<i64: 1, 8, 16>}, {transform_indices = @transform_1, window_bounds = array<i64: 1, 8, 16>}, {transform_indices = @transform_2, window_bounds = array<i64: 1, 8, 16>}, {transform_indices = @transform_3, window_bounds = array<i64: 1, 8, 16>}]} {
    %c0 = arith.constant 0 : index
    %c0_0 = arith.constant 0 : index
    %c0_1 = arith.constant 0 : index
    %0 = vector.load %arg2[%c0, %c0_0, %c0_1] : memref<1x8x16xf32, #tpu.memory_space<vmem>>, vector<1x8x16xf32>
    %1 = vector.shape_cast %0 : vector<1x8x16xf32> to vector<8x16xf32>
    %c0_2 = arith.constant 0 : index
    %c7 = arith.constant 7 : index
    %c0_3 = arith.constant 0 : index
    %2 = vector.load %arg3[%c0_2, %c7, %c0_3] : memref<1x8x16xf32, #tpu.memory_space<vmem>>, vector<1x1x16xf32>
    %3 = vector.shape_cast %2 : vector<1x1x16xf32> to vector<1x16xf32>
    %c0_4 = arith.constant 0 : index
    %c0_5 = arith.constant 0 : index
    %c0_6 = arith.constant 0 : index
    %4 = vector.load %arg4[%c0_4, %c0_5, %c0_6] : memref<1x8x16xf32, #tpu.memory_space<vmem>>, vector<1x1x16xf32>
    %5 = vector.shape_cast %4 : vector<1x1x16xf32> to vector<1x16xf32>
    %c0_i32 = arith.constant 0 : i32
    %6 = arith.cmpi sgt, %arg1, %c0_i32 : i32
    %7 = arith.extui %6 : i1 to i32
    %8 = arith.sitofp %7 : i32 to f32
    %9 = vector.broadcast %8 : f32 to vector<1x16xf32>
    %10 = arith.mulf %3, %9 : vector<1x16xf32>
    %c1_i32 = arith.constant 1 : i32
    %11 = arith.cmpi slt, %arg1, %c1_i32 : i32
    %12 = arith.extui %11 : i1 to i32
    %13 = arith.sitofp %12 : i32 to f32
    %14 = vector.broadcast %13 : f32 to vector<1x16xf32>
    %15 = arith.mulf %5, %14 : vector<1x16xf32>
    %16 = vector.extract_strided_slice %1 {offsets = [0, 0], sizes = [7, 16], strides = [1, 1]} : vector<8x16xf32> to vector<7x16xf32>
    %17 = tpu.concatenate %10, %16 in 0 : vector<1x16xf32>, vector<7x16xf32> -> vector<8x16xf32>
    %18 = vector.extract_strided_slice %1 {offsets = [1, 0], sizes = [7, 16], strides = [1, 1]} : vector<8x16xf32> to vector<7x16xf32>
    %19 = tpu.concatenate %18, %15 in 0 : vector<7x16xf32>, vector<1x16xf32> -> vector<8x16xf32>
    %20 = arith.addf %17, %19 : vector<8x16xf32>
    %cst = arith.constant 5.000000e-01 : f32
    %21 = vector.broadcast %cst : f32 to vector<8x16xf32>
    %22 = arith.mulf %21, %20 : vector<8x16xf32>
    %23 = arith.subf %1, %22 : vector<8x16xf32>
    %cst_7 = arith.constant 0.000000e+00 : f32
    %24 = vector.broadcast %cst_7 : f32 to vector<8x1xf32>
    %25 = vector.extract_strided_slice %23 {offsets = [0, 0], sizes = [8, 15], strides = [1, 1]} : vector<8x16xf32> to vector<8x15xf32>
    %26 = tpu.concatenate %24, %25 in 1 : vector<8x1xf32>, vector<8x15xf32> -> vector<8x16xf32>
    %27 = vector.extract_strided_slice %23 {offsets = [0, 1], sizes = [8, 15], strides = [1, 1]} : vector<8x16xf32> to vector<8x15xf32>
    %28 = tpu.concatenate %27, %24 in 1 : vector<8x15xf32>, vector<8x1xf32> -> vector<8x16xf32>
    %29 = arith.addf %26, %28 : vector<8x16xf32>
    %cst_8 = arith.constant 5.000000e-01 : f32
    %30 = vector.broadcast %cst_8 : f32 to vector<8x16xf32>
    %31 = arith.mulf %30, %29 : vector<8x16xf32>
    %32 = arith.subf %23, %31 : vector<8x16xf32>
    %c0_9 = arith.constant 0 : index
    %c0_10 = arith.constant 0 : index
    %c0_11 = arith.constant 0 : index
    %33 = vector.load %arg5[%c0_9, %c0_10, %c0_11] : memref<1x8x16xf32, #tpu.memory_space<vmem>>, vector<1x8x16xf32>
    %34 = vector.shape_cast %33 : vector<1x8x16xf32> to vector<8x16xf32>
    %35 = vector.shape_cast %32 : vector<8x16xf32> to vector<1x8x16xf32>
    tpu.vector_store %arg5[%c0_9, %c0_10, %c0_11], %35 {strides = array<i32>} : memref<1x8x16xf32, #tpu.memory_space<vmem>>, vector<1x8x16xf32>,
    return
  }
  func.func @transform_0(%arg0: i32, %arg1: i32) -> (i32, i32, i32) {
    %c0_i32 = arith.constant 0 : i32
    %c0_i32_0 = arith.constant 0 : i32
    return %arg0, %arg1, %c0_i32 : i32, i32, i32
  }
  func.func @transform_1(%arg0: i32, %arg1: i32) -> (i32, i32, i32) {
    %c1_i32 = arith.constant 1 : i32
    %0 = arith.muli %arg1, %c1_i32 : i32
    %c1_i32_0 = arith.constant 1 : i32
    %1 = arith.subi %0, %c1_i32_0 : i32
    %c0_i32 = arith.constant 0 : i32
    %2 = arith.maxsi %1, %c0_i32 : i32
    %c0_i32_1 = arith.constant 0 : i32
    %c0_i32_2 = arith.constant 0 : i32
    return %arg0, %2, %c0_i32_1 : i32, i32, i32
  }
  func.func @transform_2(%arg0: i32, %arg1: i32) -> (i32, i32, i32) {
    %c1_i32 = arith.constant 1 : i32
    %0 = arith.addi %arg1, %c1_i32 : i32
    %c1_i32_0 = arith.constant 1 : i32
    %1 = arith.muli %0, %c1_i32_0 : i32
    %c1_i32_1 = arith.constant 1 : i32
    %2 = arith.minsi %1, %c1_i32_1 : i32
    %c0_i32 = arith.constant 0 : i32
    %c0_i32_2 = arith.constant 0 : i32
    return %arg0, %2, %c0_i32 : i32, i32, i32
  }
  func.func @transform_3(%arg0: i32, %arg1: i32) -> (i32, i32, i32) {
    %c0_i32 = arith.constant 0 : i32
    %c0_i32_0 = arith.constant 0 : i32
    return %arg0, %arg1, %c0_i32 : i32, i32, i32
  }
}

</mosaic_0001>

<bundles_post_ra>
// kernel: tpu_custom_call.1
= control target key start
LH: loop header
LB: loop body
LE: loop exit
PB: predicated region body
PF: predicated region fallthrough
CT: control target
= control target key end

     0   :  { %s1358_s0 = inlined_call_operand.hbm [shape: f32[3,16,16], index: 0, kind: input, shape index: {}]   ;;  %s1359_s1 = inlined_call_operand.hbm [shape: f32[3,16,16], index: 1, kind: input, shape index: {}]   ;;  %s1360_s2 = inlined_call_operand.hbm [shape: f32[3,16,16], index: 2, kind: input, shape index: {}]   ;;  %s1361_s3 = inlined_call_operand.hbm [shape: f32[3,16,16], index: 3, kind: output, shape index: {}]  }
   0x1   :  { %1377 = sst [smem:[#allocation21_spill]] %s1359_s1 }
   0x2   :  { %1378 = sst [smem:[#allocation22_spill]] %s1361_s3 }
   0x3   :  { %8 = vsyncpa [#allocation3], 0 }
   0x4   :  { %10 = vsyncpa [#allocation3 + $0x1], 0 }
   0x5   :  { %11 = vsyncpa [#allocation6], 0 }
   0x6   :  { %13 = vsyncpa [#allocation6 + $0x1], 0 }
   0x7   :  { %14 = vsyncpa [#allocation4], 0 }
   0x8   :  { %16 = vsyncpa [#allocation4 + $0x1], 0  ;;  %s939_s12 = smov 0   ;;  %s941_s13 = smov 0  }
   0x9   :  { %s943_s14 = smov 0   ;;  %s945_s15 = smov 0  }
   0xa   :  { %s947_s16 = smov 0   ;;  %s949_s17 = smov 0  }
   0xb   :  { %s951_s18 = smov 0   ;;  %s953_s19 = smov 0  }
   0xc   :  { %s955_s20 = smov 0   ;;  %s957_s21 = smov 0  }
   0xd   :  { %s959_s22 = smov 0   ;;  %s961_s23 = smov 0  }
   0xe   :  { %s963_s24 = smov 0   ;;  %s965_s25 = smov 0  }
   0xf LB: > { %1379 = sst [smem:[#allocation13_spill]] %s879_s17  ;;  %s1008_s26 = sadd.s32 4294967295, %s911_s25   ;;  %s911_s25 = sphi %s965_s25, %s22_s25   ;;  %s907_s24 = sphi %s963_s24, %s1436_s24   ;;  %s903_s23 = sphi %s961_s23, %s1435_s23   ;;  %s899_s22 = sphi %s959_s22, %s1434_s22   ;;  %s895_s21 = sphi %s957_s21, %s1433_s21   ;;  %s891_s20 = sphi %s955_s20, %s1423_s20   ;;  %s887_s19 = sphi %s953_s19, %s1432_s19   ;;  %s883_s18 = sphi %s951_s18, %s1431_s18   ;;  %s879_s17 = sphi %s949_s17, %s1421_s17   ;;  %s875_s16 = sphi %s947_s16, %s1430_s16   ;;  %s871_s15 = sphi %s945_s15, %s1429_s15   ;;  %s867_s14 = sphi %s943_s14, %s1428_s14   ;;  %s863_s13 = sphi %s941_s13, %s1427_s13   ;;  %s859_s12 = sphi %s939_s12, %s1426_s12  }
  0x10   : > { %1380 = sst [smem:[#allocation14_spill]] %s891_s20  ;;  %s31_s27 = sadd.s32 1, %s903_s23 }
  0x11   : > { %1381 = sst [smem:[#allocation15_spill]] %s895_s21  ;;  %p32_p0 = scmp.ge.s32.totalorder %s31_s27, 2 }
  0x12   : > { %1382 = sst [smem:[#allocation16_spill]] %s899_s22  ;;  %s34_s28 = sadd.s32 1, %s907_s24 }
  0x13   : > { %p1370_p1 = scmp.eq.s32.totalorder %s911_s25, 0  ;;  %p1369_p2 = scmp.eq.s32.totalorder %s1008_s26, 0 }
  0x14   : > { %s1438_s27 = smov (%p32_p0, %s31_s27), 0  ;;  %s1440_s28 = smov (!%p32_p0, %s34_s28), %s907_s24 }
  0x15   : > { %1383 = sst [smem:[#allocation17_spill]] %s1438_s27  ;;  %s39_s29 = ssub.s32 %s903_s23, %s1438_s27 }
  0x16   : > { %p36_p3 = scmp.ge.s32.totalorder %s1440_s28, 3  ;;  %s77_s30 = sadd.s32 1, %s879_s17 }
  0x17   : > { %p84_p4 = scmp.ne.s32.totalorder %s879_s17, %s875_s16  ;;  %p90_p6 = scmp.ne.s32.totalorder %s875_s16, %s871_s15 }
  0x18   : > { %s1442_s28 = smov (%p36_p3, %s1440_s28), 0  ;;  %p1368_p9 = scmp.lt.s32.totalorder %s911_s25, 6 }
  0x19   : > { %1384 = sst [smem:[#allocation18_spill]] %s1442_s28  ;;  %s1024_s4 = ssub.s32 %s907_s24, %s1442_s28 }
  0x1a   : > { %s1027_s5 = sor.u32 %s39_s29, %s1024_s4  ;;  %p1035_p7 = por %p84_p4, %p1370_p1 }
  0x1b   : > { %p1041_p8 = por %p90_p6, %p1369_p2  ;;  %p1367_p10 = scmp.eq.s32.totalorder %s1024_s4, 0 }
  0x1c   : > { %s506_s8 = sshll.u32 %s907_s24, 1  ;;  %s196_s9 = sand.u32 1, %s911_s25  }
  0x1d   : > { %s1386_s7 = scalar_select %p1041_p8, 1, 0 }
  0x1e   : > { %s198_s10 = sand.u32 1, %s879_s17   ;;  %s1366_s29 = sshll.u32 %s907_s24, 8 }
  0x1f   : > { %s1053_s11 = scalar_select %p1367_p10, %s879_s17, %s77_s30  }
  0x20   : > { %s508_s15 = sshll.u32 %s198_s10, 3  ;;  %s1388_s1 = sld [smem:[#allocation21_spill]] }
  0x21   : > { %1387 = sst [smem:[#allocation19_spill]] %s1053_s11  ;;  %s200_s28 = scalar_lea.vmem [#allocation5], %s508_s15 }
  0x22   : > { %s212_s27 = sshll.u32 %s200_s28, 4  ;;  %p1069_p11 = pnand %p1368_p9, %p1035_p7  ;;  %s1063_s27 = int_to_ptr.vmem [resolvable:$true] %s212_s27 }
  0x23   : > { %s1075_s28 = scalar_lea.sflag [#allocation6], %s196_s9 }
  0x24   : > { %p665_p3 = pneg %p1069_p11 }
  0x26   : > { %s1061_s21 = scalar_lea.hbm %s1388_s1, %s1366_s29  ;;  %s668_s10 = scalar_lea.hbm %s1388_s1, 768 }
  0x27   : > { %s663_s3 = scalar_lea.hbm %s1061_s21, 128  ;;  %p669_p7 = scmp.lt.u32.totalorder %s1061_s21, %s1388_s1 }
  0x28   : > { %p664_p0 = scmp.ne.s32.totalorder %s1061_s21, %s663_s3  ;;  %p670_p10 = scmp.lt.u32.totalorder %s668_s10, %s663_s3 }
  0x29   : > { %p672_p2 = scmp.lt.u32.totalorder %s663_s3, %s1061_s21 }
  0x2a   : > { %p666_p4 = pnand %p665_p3, %p664_p0  ;;  %p671_p9 = por %p670_p10, %p669_p7 }
  0x2c   : > { %p667_p6 = pneg %p666_p4  ;;  %p673_p1 = por %p672_p2, %p671_p9 }
  0x2e   : > { %p674_p5 = pnand %p673_p1, %p667_p6 }
  0x30   : > { %677 = shalt.err (!%p674_p5)
}
  0x31   : > { %s678_s9 = scalar_lea.vmem %s1063_s27, 128  ;;  %s913_s22 = smov [#allocation5]  }
  0x32   : > { %p679_p0 = scmp.ne.s32.totalorder %s1063_s27, %s678_s9  ;;  %s683_s6 = sshll.u32 %s913_s22, 4  ;;  %s684_s6 = int_to_ptr.vmem [resolvable:$false] %s683_s6 }
  0x33   : > { %s685_s29 = scalar_lea.vmem %s684_s6, 256  ;;  %p686_p13 = scmp.lt.s32.totalorder %s1063_s27, %s684_s6 }
  0x34   : > { %p681_p4 = pnand %p679_p0, %p665_p3  ;;  %p687_p10 = scmp.lt.s32.totalorder %s685_s29, %s678_s9 }
  0x36   : > { %p682_p12 = pneg %p681_p4  ;;  %p688_p7 = por %p687_p10, %p686_p13 }
  0x38   : > { %p689_p2 = pnand %p688_p7, %p682_p12 }
  0x3a   : > { %692 = shalt.err (!%p689_p2)
}
  0x3b   : > { %539 = dma.hbm_to_vmem [thread:$0]  (!%p1069_p11), %s1061_s21, 128, %s1063_s27, %s1075_s28  }
  0x3c   : > { %p1390_p1 = scmp.lt.s32.totalorder %s911_s25, 7  ;;  %p1391_p5 = scmp.ge.s32.totalorder %s911_s25, 1 }
  0x3d   : > { %s500_s3 = sadd.s32 4294967294, %s911_s25   ;;  %s43_s10 = sadd.s32 1, %s891_s20 }
  0x3e   : > { %p1107_p9 = pnand %p1391_p5, %p1390_p1  ;;  %p50_p12 = scmp.ne.s32.totalorder %s891_s20, %s887_s19 }
  0x3f   : > { %p1393_p13 = scmp.eq.s32.totalorder %s1027_s5, 0  ;;  %p1395_p3 = scmp.eq.s32.totalorder %s911_s25, 0 }
  0x40   : > { %p56_p11 = scmp.ne.s32.totalorder %s887_s19, %s883_s18  ;;  %p150_p0 = scmp.eq.s32.totalorder %s1008_s26, 5 }
  0x41   : > { %s1118_s15 = scalar_select %p1393_p13, %s891_s20, %s43_s10  }
  0x42   : > { %p1122_p6 = por %p1395_p3, %p50_p12  ;;  %p156_p4 = scmp.eq.s32.totalorder %s500_s3, 5 }
  0x43   : > { %1394 = sst [smem:[#allocation20_spill]] %s1118_s15  ;;  %p1397_p10 = scmp.eq.s32.totalorder %s1008_s26, 0 }
  0x44   : > { %s176_s27 = sand.u32 1, %s891_s20   ;;  %p1136_p2 = por %p150_p0, %p50_p12 }
  0x45   : > { %p1131_p7 = por %p1397_p10, %p56_p11  ;;  %p1140_p1 = por %p156_p4, %p56_p11 }
  0x46   : > { %s1399_s5 = scalar_select %p1136_p2, 1, 0 }
  0x47   : > { %s1398_s21 = scalar_select %p1131_p7, 1, 0 }
  0x48   : > { %s1400_s22 = scalar_select %p1140_p1, 1, 0 }
  0x49   : > { %s505_s6 = sshll.u32 %s176_s27, 3  ;;  %s185_s29 = sadd.s32 %s903_s23, %s506_s8 }
  0x4a   : > { %s507_s10 = sshll.u32 %s185_s29, 7  ;;  %s180_s1 = scalar_lea.vmem [#allocation2], %s505_s6 }
  0x4b   : > { %s189_s3 = sshll.u32 %s180_s1, 4  ;;  %s1150_s17 = scalar_lea.hbm %s1358_s0, %s507_s10  ;;  %s1152_s3 = int_to_ptr.vmem [resolvable:$true] %s189_s3 }
  0x4c   : > { %p1401_p5 = scmp.lt.s32.totalorder %s911_s25, 6  ;;  %s177_s1 = scalar_lea.sflag [#allocation3], %s176_s27 }
  0x4d   : > { %s693_s8 = scalar_lea.hbm %s1150_s17, 128  ;;  %s698_s9 = scalar_lea.hbm %s1358_s0, 768 }
  0x4e   : > { %p1158_p12 = pnand %p1401_p5, %p1122_p6  ;;  %p694_p13 = scmp.ne.s32.totalorder %s1150_s17, %s693_s8 }
  0x4f   : > { %p699_p6 = scmp.lt.u32.totalorder %s1150_s17, %s1358_s0  ;;  %p700_p4 = scmp.lt.u32.totalorder %s698_s9, %s693_s8 }
  0x50   : > { %p695_p3 = pneg %p1158_p12  ;;  %p702_p5 = scmp.lt.u32.totalorder %s693_s8, %s1150_s17 }
  0x51   : > { %p701_p10 = por %p700_p4, %p699_p6 }
  0x52   : > { %p696_p11 = pnand %p695_p3, %p694_p13 }
  0x53   : > { %p703_p1 = por %p702_p5, %p701_p10 }
  0x54   : > { %p697_p0 = pneg %p696_p11 }
  0x56   : > { %p704_p2 = pnand %p703_p1, %p697_p0 }
  0x58   : > { %707 = shalt.err (!%p704_p2)
}
  0x59   : > { %s708_s27 = scalar_lea.vmem %s1152_s3, 128  ;;  %s914_s10 = smov [#allocation2]  }
  0x5a   : > { %p709_p13 = scmp.ne.s32.totalorder %s1152_s3, %s708_s27  ;;  %s713_s11 = sshll.u32 %s914_s10, 4  ;;  %s714_s11 = int_to_ptr.vmem [resolvable:$false] %s713_s11 }
  0x5b   : > { %s715_s15 = scalar_lea.vmem %s714_s11, 256  ;;  %p716_p7 = scmp.lt.s32.totalorder %s1152_s3, %s714_s11 }
  0x5c   : > { %p711_p11 = pnand %p709_p13, %p695_p3  ;;  %p717_p6 = scmp.lt.s32.totalorder %s715_s15, %s708_s27 }
  0x5e   : > { %p712_p8 = pneg %p711_p11  ;;  %p718_p4 = por %p717_p6, %p716_p7 }
  0x60   : > { %p719_p10 = pnand %p718_p4, %p712_p8 }
  0x62   : > { %722 = shalt.err (!%p719_p10)
}
  0x63   : > { %536 = dma.hbm_to_vmem [thread:$0]  (!%p1158_p12), %s1150_s17, 128, %s1152_s3, %s177_s1  }
  0x64   : > { %s111_s8 = sadd.s32 1, %s867_s14  ;;  %p118_p8 = scmp.ne.s32.totalorder %s867_s14, %s863_s13 }
  0x65   : > { %p124_p7 = scmp.ne.s32.totalorder %s863_s13, %s859_s12  ;;  %s221_s9 = sand.u32 1, %s867_s14  }
  0x66   : > { %p1403_p2 = scmp.eq.s32.totalorder %s911_s25, 0  ;;  %p1404_p3 = scmp.eq.s32.totalorder %s1008_s26, 0 }
  0x67   : > { %s512_s6 = sshll.u32 %s221_s9, 3  ;;  %p1406_p5 = scmp.eq.s32.totalorder %s1024_s4, 0 }
  0x68   : > { %p120_p1 = por %p118_p8, %p1403_p2  ;;  %p1197_p0 = por %p124_p7, %p1404_p3 }
  0x69   : > { %s1204_s29 = scalar_select %p1406_p5, %s867_s14, %s111_s8  }
  0x6a   : > { %s1405_s20 = scalar_select %p1197_p0, 1, 0 }
  0x6b   : > { %s1407_s27 = sshll.u32 %s907_s24, 8  ;;  %s223_s12 = scalar_lea.vmem [#allocation7], %s512_s6 }
  0x6c   : > { %s855_s10 = sadd.s32 128, %s1407_s27  ;;  %s235_s3 = sshll.u32 %s223_s12, 4  ;;  %s1213_s3 = int_to_ptr.vmem [resolvable:$true] %s235_s3 }
  0x6d   : > { %s1211_s17 = scalar_lea.hbm %s1360_s2, %s855_s10  ;;  %p1408_p12 = scmp.lt.s32.totalorder %s911_s25, 6 }
  0x6e   : > { %s723_s1 = scalar_lea.hbm %s1211_s17, 128  ;;  %s728_s6 = scalar_lea.hbm %s1360_s2, 768 }
  0x6f   : > { %p1217_p13 = pnand %p1408_p12, %p120_p1  ;;  %p724_p11 = scmp.ne.s32.totalorder %s1211_s17, %s723_s1 }
  0x70   : > { %p729_p8 = scmp.lt.u32.totalorder %s1211_s17, %s1360_s2  ;;  %p730_p7 = scmp.lt.u32.totalorder %s728_s6, %s723_s1 }
  0x71   : > { %p725_p6 = pneg %p1217_p13  ;;  %p732_p1 = scmp.lt.u32.totalorder %s723_s1, %s1211_s17 }
  0x72   : > { %p731_p2 = por %p730_p7, %p729_p8 }
  0x73   : > { %p726_p4 = pnand %p725_p6, %p724_p11 }
  0x74   : > { %p733_p3 = por %p732_p1, %p731_p2 }
  0x75   : > { %p727_p10 = pneg %p726_p4 }
  0x77   : > { %p734_p5 = pnand %p733_p3, %p727_p10 }
  0x79   : > { %737 = shalt.err (!%p734_p5)
}
  0x7a   : > { %s738_s11 = scalar_lea.vmem %s1213_s3, 128  ;;  %s915_s15 = smov [#allocation7]  }
  0x7b   : > { %p739_p12 = scmp.ne.s32.totalorder %s1213_s3, %s738_s11  ;;  %s743_s12 = sshll.u32 %s915_s15, 4  ;;  %s744_s12 = int_to_ptr.vmem [resolvable:$false] %s743_s12 }
  0x7c   : > { %s745_s8 = scalar_lea.vmem %s744_s12, 256  ;;  %p746_p0 = scmp.lt.s32.totalorder %s1213_s3, %s744_s12 }
  0x7d   : > { %p741_p11 = pnand %p739_p12, %p725_p6  ;;  %p747_p8 = scmp.lt.s32.totalorder %s745_s8, %s738_s11 }
  0x7f   : > { %p742_p4 = pneg %p741_p11  ;;  %p748_p7 = por %p747_p8, %p746_p0 }
  0x81   : > { %p749_p2 = pnand %p748_p7, %p742_p4 }
  0x83   : > { %752 = shalt.err (!%p749_p2)
}
  0x84   : > { %542 = dma.hbm_to_vmem [thread:$0]  (!%p1217_p13), %s1211_s17, 128, %s1213_s3, %s1075_s28  }
  0x85   : > { %244 = sbr.rel (%p1107_p9) target bundleno = 315 (0x13b), region = 32  ;;  %s1250_s1 = sand.u32 (!%p1107_p9), 1, %s887_s19  }
  0x86   : > { %s516_s9 = sshll.u32 (!%p1107_p9), %s1250_s1, 3  ;;  %s247_s6 = scalar_lea.sflag (!%p1107_p9), [#allocation3], %s1250_s1 }
  0x87   : > { %s250_s27 = scalar_lea.vmem (!%p1107_p9), [#allocation2], %s516_s9  ;;  %p1410_p0 = scmp.ne.s32.totalorder (!%p1107_p9), %s1398_s21, 0 }
  0x8c   : > { %838 = dma.done.wait (%p1410_p0), %s247_s6, 128  }
  0x8d   : > { %840 = vsyncadd (%p1410_p0), %s247_s6, 4294967168  ;;  %s255_s28 = sand.u32 1, %s1008_s26   ;;  %s257_s30 = sand.u32 1, %s875_s16  }
  0x8e   : > { %s517_s17 = sshll.u32 %s257_s30, 3  ;;  %s256_s3 = scalar_lea.sflag [#allocation6], %s255_s28 }
  0x8f   : > { %s259_s4 = scalar_lea.vmem [#allocation5], %s517_s17  ;;  %p1411_p9 = scmp.ne.s32.totalorder %s1386_s7, 0 }
  0x91   : > { %842 = dma.done.wait (%p1411_p9), %s256_s3, 128  }
  0x92   : > { %844 = vsyncadd (%p1411_p9), %s256_s3, 4294967168  ;;  %s266_s10 = sand.u32 1, %s863_s13   ;;  %p1412_p13 = scmp.ne.s32.totalorder %s1405_s20, 0 }
  0x93   : > { %s518_s11 = sshll.u32 %s266_s10, 3 }
  0x94   : > { %s268_s15 = scalar_lea.vmem [#allocation7], %s518_s11 }
  0x95   : > { %846 = dma.done.wait (%p1412_p13), %s256_s3, 128  }
  0x96   : > { %848 = vsyncadd (%p1412_p13), %s256_s3, 4294967168  ;;  %s1413_s26 = sld [smem:[#allocation15_spill]]  ;;  %v307_v1 = vld [vmem:[%s250_s27] sm:$0xff]  ;;  %v308_v2 = vld [vmem:[%s259_s4 + $0x7] sm:$0x1]  ;;  %vm323_vm0 = vcmask 1040384  }
  0x97   : > { %v309_v3 = vld [vmem:[%s268_s15] sm:$0x1]  ;;  %s1414_s7 = sld [smem:[#allocation16_spill]]  ;;  %v321_v7 = vrot.slane %v307_v1, 7  ;;  %v325_v8 = vrot.slane %v307_v1, 1  ;;  %vm330_vm1 = vcmask 1046528  }
  0x98   : > { %s916_s20 = smov 1   ;;  %s917_s27 = smov 127   ;;  %vm339_vm2 = vcmask 7168   ;;  %vm344_vm3 = vcmask 121856   ;;  %vm349_vm4 = vcmask 130048  }
  0x99   : > { %s300_s3 = scalar_lea.vmem [#allocation8], %s516_s9  ;;  %s1415_s15 = sld [smem:[#allocation22_spill]] }
  0x9a   : > { %s367_s4 = sshll.u32 %s300_s3, 4  ;;  %p1417_p3 = scmp.ne.s32.totalorder %s1399_s5, 0  ;;  %s1282_s4 = int_to_ptr.vmem [resolvable:$true] %s367_s4 }
  0x9b   : > { %s918_s9 = smov [#allocation8]  }
  0x9c   : > { %p310_p6 = scmp.gt.s32.totalorder %s1413_s26, 0  ;;  %p315_p10 = scmp.lt.s32.totalorder %s1413_s26, 1 }
  0x9d   : > { %s521_s28 = sshll.u32 %s1414_s7, 1 }
  0x9e   : > { %s311_s21 = scalar_select %p310_p6, 1, 0 }
  0x9f   : > { %s316_s12 = scalar_select %p315_p10, 1, 0 }
  0xa0   : > { %s312_s8 = scvt.s32.f32 %s311_s21  ;;  %s363_s30 = sadd.s32 %s1413_s26, %s521_s28 }
  0xa1   : > { %s317_s6 = scvt.s32.f32 %s316_s12  ;;  %s522_s17 = sshll.u32 %s363_s30, 7 }
  0xa2   : > { %v313_v0 = vstv %s312_s8  ;;  %s1416_s8 = smov %s1415_s15  ;;  %s1280_s21 = scalar_lea.hbm %s1415_s15, %s522_s17 }
  0xa3   : > { %v318_v4 = vstv %s317_s6  ;;  %v314_v5 = vmul.f32 %v313_v0, %v308_v2  ;;  %s352_s26 = scalar_lea.sflag [#allocation4], %s1250_s1  ;;  %s753_s12 = scalar_lea.vmem %s1282_s4, 128 }
  0xa4   : > { %v319_v6 = vmul.f32 %v318_v4, %v309_v3  ;;  %p754_p1 = scmp.ne.s32.totalorder %s1282_s4, %s753_s12  ;;  %s757_s6 = sshll.u32 %s918_s9, 4  ;;  %s758_s6 = int_to_ptr.vmem [resolvable:$false] %s757_s6 }
  0xa5   : > { %v324_v9 = vsel %vm323_vm0, %v314_v5, %v321_v7  ;;  %s759_s7 = scalar_lea.vmem %s758_s6, 256  ;;  %p760_p11 = scmp.lt.s32.totalorder %s1282_s4, %s758_s6 }
  0xa6   : > { %v328_v10 = vrot.slane %v319_v6, 1  ;;  %p755_p5 = pnand %p754_p1, %p1417_p3  ;;  %p761_p4 = scmp.lt.s32.totalorder %s759_s7, %s753_s12 }
  0xa8   : > { %v331_v11 = vsel %vm330_vm1, %v325_v8, %v328_v10  ;;  %p756_p12 = pneg %p755_p5  ;;  %p762_p8 = por %p761_p4, %p760_p11 }
  0xa9   : > { %v332_v12 = vadd.f32 %v331_v11, %v324_v9 }
  0xaa   : > { %p763_p7 = pnand %p762_p8, %p756_p12 }
  0xab   : > { %v333_v13 = vmul.f32 0.5, %v332_v12 }
  0xad   : > { %v334_v14 = vsub.f32 %v307_v1, %v333_v13 }
  0xaf   : > { %336 = vrot.lane.b32.xlu0 %v334_v14, %s916_s20 }
  0xb3   : > { %341 = vrot.lane.b32.xlu0 %v334_v14, %s917_s27 }
 0x121   : > { %v337_v15 = vpop.permute.xlu0 %336 }
 0x122   : > { %v340_v17 = vsel %vm339_vm2, 0.0, %v337_v15 }
 0x125   : > { %v342_v16 = vpop.permute.xlu0 %341 }
 0x126   : > { %v345_v18 = vsel %vm344_vm3, %v342_v16, 0.0 }
 0x127   : > { %v346_v19 = vadd.f32 %v345_v18, %v340_v17 }
 0x129   : > { %v347_v20 = vmul.f32 0.5, %v346_v19 }
 0x12b   : > { %v348_v21 = vsub.f32 %v334_v14, %v347_v20 }
 0x12d   : > { %350 = vst.msk [vmem:[%s300_s3] sm:$0xff] %vm349_vm4, %v348_v21 }
 0x12e   : > { %766 = shalt.err (!%p763_p7)
}
 0x12f   : > { %s767_s1 = scalar_lea.hbm %s1280_s21, 128  ;;  %s771_s28 = scalar_lea.hbm %s1416_s8, 768 }
 0x130   : > { %p768_p2 = scmp.ne.s32.totalorder %s1280_s21, %s767_s1  ;;  %p772_p13 = scmp.lt.u32.totalorder %s1280_s21, %s1416_s8 }
 0x131   : > { %p773_p6 = scmp.lt.u32.totalorder %s771_s28, %s767_s1  ;;  %p775_p1 = scmp.lt.u32.totalorder %s767_s1, %s1280_s21 }
 0x132   : > { %p769_p0 = pnand %p768_p2, %p1417_p3 }
 0x133   : > { %p774_p10 = por %p773_p6, %p772_p13 }
 0x134   : > { %p770_p9 = pneg %p769_p0 }
 0x135   : > { %p776_p5 = por %p775_p1, %p774_p10 }
 0x137   : > { %p777_p12 = pnand %p776_p5, %p770_p9 }
 0x139   : > { %780 = shalt.err (!%p777_p12)
}
 0x13a   : > { %531 = dma.vmem_to_hbm [thread:$0]  (%p1417_p3), %s1282_s4, 128, %s1280_s21, %s352_s26  }
 0x13b PF: > { %p548_p11 = scmp.ge.s32.totalorder %s911_s25, 2  ;;  %s379_s3 = sand.u32 1, %s883_s18  }
 0x13c   : > { %p1418_p4 = scmp.ne.s32.totalorder %s1400_s22, 0  ;;  %s380_s10 = scalar_lea.sflag [#allocation4], %s379_s3 }
 0x13e   : > { %p544_p8 = pnand %p548_p11, %p1418_p4 }
 0x140   : > { %850 = dma.done.wait (!%p544_p8), %s380_s10, 128  }
 0x141   : > { %852 = vsyncadd (!%p544_p8), %s380_s10, 4294967168  ;;  %s22_s25 = sadd.s32 1, %s911_s25   ;;  %s1420_s5 = sld [smem:[#allocation13_spill]] }
 0x142   : > { %p1311_p7 = scmp.ge.s32.totalorder %s22_s25, 8   ;;  %s1421_s17 = sld [smem:[#allocation19_spill]] }
 0x143   : > { %s1422_s4 = sld [smem:[#allocation14_spill]]  ;;  %s1423_s20 = sld [smem:[#allocation20_spill]] }
 0x144   : > { %s1424_s26 = sld [smem:[#allocation17_spill]]  ;;  %s1425_s9 = sld [smem:[#allocation18_spill]] }
 0x145   : > { %s1426_s12 = smov %s863_s13  ;;  %s1427_s13 = smov %s867_s14 }
 0x146   : > { %s1428_s14 = smov %s1204_s29  ;;  %s1429_s15 = smov %s875_s16 }
 0x147   : > { %s1430_s16 = smov %s1420_s5  ;;  %s1431_s18 = smov %s887_s19 }
 0x148   : > { %s1433_s21 = smov %s903_s23  ;;  %s1434_s22 = smov %s907_s24 }
 0x149   : > { %s1432_s19 = smov %s1422_s4  ;;  %21 = sbr.rel (!%p1311_p7) target bundleno = 15 (0xf), region = 101 }
 0x14a   : > { %s1435_s23 = smov %s1424_s26  ;;  %s1436_s24 = smov %s1425_s9 }
 0x150   :  { %385 = vsyncpa [#allocation3], 1 }
 0x151   :  { %387 = vsyncpa [#allocation3 + $0x1], 1 }
 0x152   :  { %388 = vsyncpa [#allocation6], 1 }
 0x153   :  { %390 = vsyncpa [#allocation6 + $0x1], 1 }
 0x154   :  { %391 = vsyncpa [#allocation4], 1 }
 0x155   :  { %393 = vsyncpa [#allocation4 + $0x1], 1 }

</bundles_post_ra>
